<compile_context>
chip_gen: v7x
topology: tpu7x:2x2x1
jax: 0.10.0
libtpu: 0.0.40
codegen_flags: <defaults>
</compile_context>

<pallas_src>
import functools

import numpy as np
import jax
import jax.numpy as jnp
from jax.experimental import pallas as pl
from jax.experimental.pallas import tpu as pltpu

ALPHA = 0.25          # focal alpha (gamma == 2 -> p*p, exact)
EPS = 1e-8            # focal log eps (matches the PyTorch reference)
DIV_EPS = 1e-12       # guards 0/0 on degenerate/padded boxes; no effect on real values
LANES = 128           # lane-dense target/relation padding


# --------------------------------------------------------------------------------------
# Pallas kernel: one cost sub-problem per grid point p in {entity, subject, object}
# --------------------------------------------------------------------------------------
def _cost_kernel(logits_ref, pcoord_ref, tcoord_ref, onehot_ref, out_ref,
                 *, w_class, w_bbox, w_giou):
    Qt = out_ref.shape[0]
    T = out_ref.shape[-1]

    # ----- focal classification cost: gather the target-class logits FIRST (MXU one-hot
    #       matmul against the VMEM-resident [K,T] one-hot), then run the transcendentals
    #       on the [Qt, T] tile only (exact: column selection commutes with elementwise ops).
    sel = jnp.dot(logits_ref[...], onehot_ref[...],
                  preferred_element_type=jnp.float32)                     # [Qt, T]
    p = jax.nn.sigmoid(sel)
    neg = (1.0 - ALPHA) * (p * p) * (-jnp.log(1.0 - p + EPS))
    pos = ALPHA * ((1.0 - p) * (1.0 - p)) * (-jnp.log(p + EPS))
    cost_class = pos - neg                                                # [Qt, T]

    pc = pcoord_ref[...]                                                  # [Qt, 9] cx,cy,w,h,x0,y0,x1,y1,area
    tc = tcoord_ref[...]                                                  # [9, T]  same rows

    # ----- hoist the lane-extract + lane-broadcast of every pred column ONCE and reuse
    #       (JAX does not CSE broadcast_in_dim; each reuse would re-emit the XLU shuffle).
    shp = (Qt, T)
    pcx = jnp.broadcast_to(pc[:, 0:1], shp)
    pcy = jnp.broadcast_to(pc[:, 1:2], shp)
    pw = jnp.broadcast_to(pc[:, 2:3], shp)
    ph = jnp.broadcast_to(pc[:, 3:4], shp)
    px0 = jnp.broadcast_to(pc[:, 4:5], shp)
    py0 = jnp.broadcast_to(pc[:, 5:6], shp)
    px1 = jnp.broadcast_to(pc[:, 6:7], shp)
    py1 = jnp.broadcast_to(pc[:, 7:8], shp)
    ap = jnp.broadcast_to(pc[:, 8:9], shp)

    tcx, tcy, tw, th = tc[0:1, :], tc[1:2, :], tc[2:3, :], tc[3:4, :]
    tx0, ty0, tx1, ty1, at = tc[4:5, :], tc[5:6, :], tc[6:7, :], tc[7:8, :], tc[8:9, :]

    # ----- L1 cdist over (cx, cy, w, h)
    cost_bbox = (jnp.abs(pcx - tcx) + jnp.abs(pcy - tcy) +
                 jnp.abs(pw - tw) + jnp.abs(ph - th))

    # ----- generalized IoU (xyxy + areas pre-computed in the wrapper)
    inter = (jnp.maximum(jnp.minimum(px1, tx1) - jnp.maximum(px0, tx0), 0.0) *
             jnp.maximum(jnp.minimum(py1, ty1) - jnp.maximum(py0, ty0), 0.0))     # [Qt, T]
    union = ap + at - inter
    area_c = ((jnp.maximum(px1, tx1) - jnp.minimum(px0, tx0)) *
              (jnp.maximum(py1, ty1) - jnp.minimum(py0, ty0)))

    def _rcp(x):
        # EUP approx reciprocal + one Newton step (VALU): skips the full-precision divide's
        # refinement passes while keeping ~1e-7 relative error.
        r = pl.reciprocal(x, approx=True)
        return r * (2.0 - x * r)

    iou = inter * _rcp(union + DIV_EPS)
    giou = iou - (area_c - union) * _rcp(area_c + DIV_EPS)

    out_ref[...] = w_bbox * cost_bbox + w_class * cost_class - w_giou * giou


# --------------------------------------------------------------------------------------
# Wrapper: stack/pad the three sub-problems and call the kernel once
# --------------------------------------------------------------------------------------
def _round_up(x, m):
    return -(-x // m) * m


def _pad_rows(x, rows):
    return jnp.pad(x, ((0, rows - x.shape[0]), (0, 0)))


def _pred_coords(b, rows):
    b = b.astype(jnp.float32)
    cx, cy, w, h = b[:, 0:1], b[:, 1:2], b[:, 2:3], b[:, 3:4]
    x0, y0 = cx - 0.5 * w, cy - 0.5 * h
    x1, y1 = cx + 0.5 * w, cy + 0.5 * h
    area = (x1 - x0) * (y1 - y0)
    return _pad_rows(jnp.concatenate([cx, cy, w, h, x0, y0, x1, y1, area], -1), rows)


def _tgt_coords(b, lanes):
    b = b.astype(jnp.float32)
    cx, cy, w, h = b[:, 0], b[:, 1], b[:, 2], b[:, 3]
    x0, y0 = cx - 0.5 * w, cy - 0.5 * h
    x1, y1 = cx + 0.5 * w, cy + 0.5 * h
    area = (x1 - x0) * (y1 - y0)
    m = jnp.stack([cx, cy, w, h, x0, y0, x1, y1, area], 0)                 # [9, T]
    return jnp.pad(m, ((0, 0), (0, lanes - m.shape[1])))


def _tgt_onehot(ids, num_classes, lanes):
    # [K, lanes] one-hot selection matrix (padded lanes use id -1 -> all-zero column)
    ids = ids.astype(jnp.int32)
    ids = jnp.pad(ids, (0, lanes - ids.shape[0]), constant_values=-1)
    iota = jax.lax.broadcasted_iota(jnp.int32, (num_classes, lanes), 0)
    return (iota == ids[None, :]).astype(jnp.float32)


def _make_cost_fn(w_class, w_bbox, w_giou):
    kernel = functools.partial(_cost_kernel, w_class=w_class, w_bbox=w_bbox, w_giou=w_giou)

    @jax.jit
    def cost_fn(pred_logits, pred_boxes, sub_logits, sub_boxes,
                obj_logits, obj_boxes, labels, boxes, rel):
        Q, K = pred_logits.shape
        Qr = sub_logits.shape[0]
        T = labels.shape[0]
        R = rel.shape[0]
        # TODO(synk): tile the target axis for >128 targets/relations (not needed for DETR shapes)
        assert T <= LANES and R <= LANES

        # TODO(synk): skip padding the entity problem up to Qr via PrefetchScalarGridSpec +
        # per-sub-problem segment table; accepted as cheap at DETR shapes (Q=100, Qr=200).
        q8 = _round_up(max(Q, Qr), 8)
        if q8 <= 8:
            q_tile = q8
        else:
            # >=2 q-tiles so the (3, n) grid splits 3:3 across v7x's two TensorCores;
            # cap at 2048 rows (per-block VMEM is a few MiB at most, under every gen's limit)
            q_tile = min(2048, _round_up(-(-q8 // 2), 8))
        q_pad = _round_up(q8, q_tile)
        n_qt = q_pad // q_tile

        sub_ids, sub_tb = labels[rel[:, 0]], boxes[rel[:, 0]]
        obj_ids, obj_tb = labels[rel[:, 1]], boxes[rel[:, 1]]

        logits_s = jnp.stack([_pad_rows(pred_logits.astype(jnp.float32), q_pad),
                              _pad_rows(sub_logits.astype(jnp.float32), q_pad),
                              _pad_rows(obj_logits.astype(jnp.float32), q_pad)])     # [3,Qp,K]
        pcoord_s = jnp.stack([_pred_coords(pred_boxes, q_pad),
                              _pred_coords(sub_boxes, q_pad),
                              _pred_coords(obj_boxes, q_pad)])                       # [3,Qp,9]
        tcoord_s = jnp.stack([_tgt_coords(boxes, LANES),
                              _tgt_coords(sub_tb, LANES),
                              _tgt_coords(obj_tb, LANES)])                           # [3,9,128]
        onehot_s = jnp.stack([_tgt_onehot(labels, K, LANES),
                              _tgt_onehot(sub_ids, K, LANES),
                              _tgt_onehot(obj_ids, K, LANES)])                       # [3,K,128]

        cost_est = pl.CostEstimate(
            flops=2 * 3 * q_pad * K * LANES + 40 * 3 * q_pad * LANES,
            transcendentals=5 * 3 * q_pad * LANES,
            bytes_accessed=4 * (3 * q_pad * (K + 9 + LANES) + 3 * LANES * (K + 9)))

        out = pl.pallas_call(
            kernel,
            out_shape=jax.ShapeDtypeStruct((3, q_pad, LANES), jnp.float32),
            grid=(3, n_qt),
            in_specs=[
                pl.BlockSpec((None, q_tile, K), lambda p, q: (p, q, 0)),
                pl.BlockSpec((None, q_tile, 9), lambda p, q: (p, q, 0)),
                pl.BlockSpec((None, 9, LANES), lambda p, q: (p, 0, 0)),
                pl.BlockSpec((None, K, LANES), lambda p, q: (p, 0, 0)),
            ],
            out_specs=pl.BlockSpec((None, q_tile, LANES), lambda p, q: (p, q, 0)),
            compiler_params=pltpu.CompilerParams(
                dimension_semantics=("parallel", "parallel")),
            cost_estimate=cost_est,
        )(logits_s, pcoord_s, tcoord_s, onehot_s)

        # slice + combine ON DEVICE (fuses into the same jit) so only the two tiny cost
        # matrices ever cross to the host.
        C = out[0, :Q, :T]
        C_rel = out[1, :Qr, :R] + out[2, :Qr, :R]
        return C, C_rel

    return cost_fn


_get_cost_fn = functools.lru_cache(maxsize=None)(_make_cost_fn)


# --------------------------------------------------------------------------------------
# Host-side Hungarian assignment (scipy if available, pure-numpy fallback)
# --------------------------------------------------------------------------------------
try:
    from scipy.optimize import linear_sum_assignment as _scipy_lsa
except Exception:  # pragma: no cover - keep the script self-contained
    _scipy_lsa = None


def linear_sum_assignment_np(cost):
    cost = np.asarray(cost, dtype=np.float64)
    transposed = cost.shape[0] > cost.shape[1]
    a = cost.T if transposed else cost
    n, m = a.shape
    INF = 1e18
    u = np.zeros(n + 1)
    v = np.zeros(m + 1)
    p = np.zeros(m + 1, dtype=np.int64)
    way = np.zeros(m + 1, dtype=np.int64)
    for i in range(1, n + 1):
        p[0] = i
        j0 = 0
        minv = np.full(m + 1, INF)
        used = np.zeros(m + 1, dtype=bool)
        while True:
            used[j0] = True
            i0 = p[j0]
            delta = INF
            j1 = -1
            for j in range(1, m + 1):
                if not used[j]:
                    cur = a[i0 - 1, j - 1] - u[i0] - v[j]
                    if cur < minv[j]:
                        minv[j] = cur
                        way[j] = j0
                    if minv[j] < delta:
                        delta = minv[j]
                        j1 = j
            for j in range(m + 1):
                if used[j]:
                    u[p[j]] += delta
                    v[j] -= delta
                else:
                    minv[j] -= delta
            j0 = j1
            if p[j0] == 0:
                break
        while True:
            j1 = way[j0]
            p[j0] = p[j1]
            j0 = j1
            if j0 == 0:
                break
    rows, cols = [], []
    for j in range(1, m + 1):
        if p[j] != 0:
            rows.append(p[j] - 1)
            cols.append(j - 1)
    rows = np.asarray(rows, dtype=np.int64)
    cols = np.asarray(cols, dtype=np.int64)
    if transposed:
        rows, cols = cols, rows
    order = np.argsort(rows)
    return rows[order], cols[order]


def _linear_sum_assignment(cost):
    if _scipy_lsa is not None:
        r, c = _scipy_lsa(cost)
        return np.asarray(r, np.int64), np.asarray(c, np.int64)
    return linear_sum_assignment_np(cost)


# --------------------------------------------------------------------------------------
# Matcher (forward pass)
# --------------------------------------------------------------------------------------
def hungarian_matcher(outputs, targets, *, cost_class=1.0, cost_bbox=1.0, cost_giou=1.0):
    # TODO(synk): batch size > 1 would split the cost matrices like the reference; test uses bs=1
    assert len(targets) == 1
    tgt = targets[0]
    labels, boxes, rel = tgt["labels"], tgt["boxes"], tgt["rel_annotations"]

    fn = _get_cost_fn(float(cost_class), float(cost_bbox), float(cost_giou))
    C_dev, C_rel_dev = fn(outputs["pred_logits"][0], outputs["pred_boxes"][0],
                          outputs["sub_logits"][0], outputs["sub_boxes"][0],
                          outputs["obj_logits"][0], outputs["obj_boxes"][0],
                          labels, boxes, rel)

    # single device -> host transfer of just the two small cost matrices
    C, C_rel = jax.device_get((C_dev, C_rel_dev))
    C = np.asarray(C)
    C_rel = np.asarray(C_rel)

    indices = [_linear_sum_assignment(C)]
    indices_rel = [_linear_sum_assignment(C_rel)]
    return (C, C_rel), indices, indices_rel


# --------------------------------------------------------------------------------------
# Pure-JAX reference (mirrors the PyTorch math) for a correctness check
# --------------------------------------------------------------------------------------
def _cxcywh_to_xyxy(b):
    cx, cy, w, h = b[..., 0], b[..., 1], b[..., 2], b[..., 3]
    return jnp.stack([cx - 0.5 * w, cy - 0.5 * h, cx + 0.5 * w, cy + 0.5 * h], -1)


def _ref_cost(logits, boxes, tgt_ids, tgt_boxes, wc=1.0, wb=1.0, wg=1.0):
    p = jax.nn.sigmoid(logits.astype(jnp.float32))
    neg = (1 - ALPHA) * (p ** 2) * (-jnp.log(1 - p + EPS))
    pos = ALPHA * ((1 - p) ** 2) * (-jnp.log(p + EPS))
    cost_class = (pos - neg)[:, tgt_ids]
    cost_bbox = jnp.sum(jnp.abs(boxes[:, None, :] - tgt_boxes[None, :, :]), -1)
    a = _cxcywh_to_xyxy(boxes)
    b = _cxcywh_to_xyxy(tgt_boxes)
    area_a = (a[:, 2] - a[:, 0]) * (a[:, 3] - a[:, 1])
    area_b = (b[:, 2] - b[:, 0]) * (b[:, 3] - b[:, 1])
    lt = jnp.maximum(a[:, None, :2], b[None, :, :2])
    rb = jnp.minimum(a[:, None, 2:], b[None, :, 2:])
    wh = jnp.clip(rb - lt, 0)
    inter = wh[..., 0] * wh[..., 1]
    union = area_a[:, None] + area_b[None, :] - inter
    iou = inter / union
    lt2 = jnp.minimum(a[:, None, :2], b[None, :, :2])
    rb2 = jnp.maximum(a[:, None, 2:], b[None, :, 2:])
    wh2 = jnp.clip(rb2 - lt2, 0)
    area_c = wh2[..., 0] * wh2[..., 1]
    giou = iou - (area_c - union) / area_c
    return wb * cost_bbox + wc * cost_class + wg * (-giou)


# --------------------------------------------------------------------------------------
if __name__ == "__main__":
    key = jax.random.PRNGKey(0)
    bs, Q, Qr, K, T, R = 1, 32, 64, 32, 8, 4   # small shapes (ref: 100/200 queries, 152 classes)

    ks = jax.random.split(key, 12)

    def rand_boxes(k, n):
        cxcy = jax.random.uniform(k, (n, 2), minval=0.3, maxval=0.7)
        wh = jax.random.uniform(jax.random.fold_in(k, 1), (n, 2), minval=0.1, maxval=0.3)
        return jnp.concatenate([cxcy, wh], -1).astype(jnp.float32)

    outputs = {
        "pred_logits": jax.random.normal(ks[0], (bs, Q, K), jnp.float32),
        "pred_boxes": rand_boxes(ks[1], Q)[None],
        "sub_logits": jax.random.normal(ks[2], (bs, Qr, K), jnp.float32),
        "sub_boxes": rand_boxes(ks[3], Qr)[None],
        "obj_logits": jax.random.normal(ks[4], (bs, Qr, K), jnp.float32),
        "obj_boxes": rand_boxes(ks[5], Qr)[None],
    }
    targets = [{
        "labels": jax.random.randint(ks[6], (T,), 0, K, jnp.int32),
        "boxes": rand_boxes(ks[7], T),
        "image_id": 0,
        "orig_size": jnp.array([480, 640], jnp.int32),
        "size": jnp.array([480, 640], jnp.int32),
        "rel_annotations": jnp.stack(
            [jax.random.randint(ks[8], (R,), 0, T, jnp.int32),
             jax.random.randint(ks[9], (R,), 0, T, jnp.int32),
             jax.random.randint(ks[10], (R,), 0, K, jnp.int32)], -1),
    }]
    tgt = targets[0]

    # run the fused Pallas kernel once and block on the device result
    cost_fn = _get_cost_fn(1.0, 1.0, 1.0)
    dev_out = cost_fn(outputs["pred_logits"][0], outputs["pred_boxes"][0],
                      outputs["sub_logits"][0], outputs["sub_boxes"][0],
                      outputs["obj_logits"][0], outputs["obj_boxes"][0],
                      tgt["labels"], tgt["boxes"], tgt["rel_annotations"])
    jax.block_until_ready(dev_out)

    # full matcher forward (one launch, one tiny host transfer, host Hungarian)
    (C, C_rel), indices, indices_rel = hungarian_matcher(outputs, targets)

    # correctness check vs pure-JAX reference of the PyTorch math
    # (tolerance 1e-3 accommodates the EUP approx-reciprocal + Newton path in the kernel)
    C_ref = _ref_cost(outputs["pred_logits"][0], outputs["pred_boxes"][0],
                      tgt["labels"], tgt["boxes"])
    rel = tgt["rel_annotations"]
    C_rel_ref = (_ref_cost(outputs["sub_logits"][0], outputs["sub_boxes"][0],
                           tgt["labels"][rel[:, 0]], tgt["boxes"][rel[:, 0]])
                 + _ref_cost(outputs["obj_logits"][0], outputs["obj_boxes"][0],
                             tgt["labels"][rel[:, 1]], tgt["boxes"][rel[:, 1]]))
    np.testing.assert_allclose(np.asarray(C), np.asarray(C_ref), rtol=1e-3, atol=1e-3)
    np.testing.assert_allclose(np.asarray(C_rel), np.asarray(C_rel_ref), rtol=1e-3, atol=1e-3)

    # assignments are valid index pairs
    ri, ci = indices[0]
    assert len(ri) == T and len(set(ci.tolist())) == T
    ri1, ci1 = indices_rel[0]
    assert len(ri1) == R and len(set(ci1.tolist())) == R

    print("KERNEL_OK")
</pallas_src>

<mosaic_0001>
module attributes {stable_mosaic.version = 11 : i64} {
  func.func @_cost_kernel(%arg0: i32, %arg1: i32, %arg2: memref<1x32x32xf32, #tpu.memory_space<vmem>>, %arg3: memref<1x32x9xf32, #tpu.memory_space<vmem>>, %arg4: memref<1x9x128xf32, #tpu.memory_space<vmem>>, %arg5: memref<1x32x128xf32, #tpu.memory_space<vmem>>, %arg6: memref<1x32x128xf32, #tpu.memory_space<vmem>>) attributes {dimension_semantics = [#tpu.dimension_semantics<parallel>, #tpu.dimension_semantics<parallel>], iteration_bounds = array<i64: 3, 2>, scalar_prefetch = 0 : i64, scratch_operands = 0 : i64, tpu.core_type = #tpu.core_type<tc>, window_params = [{transform_indices = @transform_0, window_bounds = array<i64: 1, 32, 32>}, {transform_indices = @transform_1, window_bounds = array<i64: 1, 32, 9>}, {transform_indices = @transform_2, window_bounds = array<i64: 1, 9, 128>}, {transform_indices = @transform_3, window_bounds = array<i64: 1, 32, 128>}, {transform_indices = @transform_4, window_bounds = array<i64: 1, 32, 128>}]} {
    %c0 = arith.constant 0 : index
    %c0_0 = arith.constant 0 : index
    %c0_1 = arith.constant 0 : index
    %0 = vector.load %arg2[%c0, %c0_0, %c0_1] : memref<1x32x32xf32, #tpu.memory_space<vmem>>, vector<1x32x32xf32>
    %1 = vector.shape_cast %0 : vector<1x32x32xf32> to vector<32x32xf32>
    %c0_2 = arith.constant 0 : index
    %c0_3 = arith.constant 0 : index
    %c0_4 = arith.constant 0 : index
    %2 = vector.load %arg5[%c0_2, %c0_3, %c0_4] : memref<1x32x128xf32, #tpu.memory_space<vmem>>, vector<1x32x128xf32>
    %3 = vector.shape_cast %2 : vector<1x32x128xf32> to vector<32x128xf32>
    %cst = arith.constant dense<0.000000e+00> : vector<32x128xf32>
    %4 = tpu.matmul %1, %3, %cst {dimension_numbers = #tpu.dot_dimension_numbers<[1], [0], [0], [1], [0, 0, 1, 1], [], []>} : vector<32x32xf32>, vector<32x128xf32>, vector<32x128xf32> -> vector<32x128xf32>
    %5 = arith.negf %4 : vector<32x128xf32>
    %6 = math.exp %5 : vector<32x128xf32>
    %cst_5 = arith.constant 1.000000e+00 : f32
    %7 = vector.broadcast %cst_5 : f32 to vector<32x128xf32>
    %8 = arith.addf %7, %6 : vector<32x128xf32>
    %9 = arith.divf %7, %8 : vector<32x128xf32>
    %10 = arith.mulf %9, %9 : vector<32x128xf32>
    %cst_6 = arith.constant 7.500000e-01 : f32
    %11 = vector.broadcast %cst_6 : f32 to vector<32x128xf32>
    %12 = arith.mulf %11, %10 : vector<32x128xf32>
    %cst_7 = arith.constant 1.000000e+00 : f32
    %13 = vector.broadcast %cst_7 : f32 to vector<32x128xf32>
    %14 = arith.subf %13, %9 : vector<32x128xf32>
    %cst_8 = arith.constant 9.99999993E-9 : f32
    %15 = vector.broadcast %cst_8 : f32 to vector<32x128xf32>
    %16 = arith.addf %14, %15 : vector<32x128xf32>
    %17 = math.log %16 : vector<32x128xf32>
    %cst_9 = arith.constant 0.000000e+00 : f32
    %18 = vector.broadcast %cst_9 : f32 to vector<32x128xf32>
    %19 = arith.subf %18, %17 : vector<32x128xf32>
    %20 = arith.mulf %12, %19 : vector<32x128xf32>
    %cst_10 = arith.constant 1.000000e+00 : f32
    %21 = vector.broadcast %cst_10 : f32 to vector<32x128xf32>
    %22 = arith.subf %21, %9 : vector<32x128xf32>
    %cst_11 = arith.constant 1.000000e+00 : f32
    %23 = vector.broadcast %cst_11 : f32 to vector<32x128xf32>
    %24 = arith.subf %23, %9 : vector<32x128xf32>
    %25 = arith.mulf %22, %24 : vector<32x128xf32>
    %cst_12 = arith.constant 2.500000e-01 : f32
    %26 = vector.broadcast %cst_12 : f32 to vector<32x128xf32>
    %27 = arith.mulf %26, %25 : vector<32x128xf32>
    %cst_13 = arith.constant 9.99999993E-9 : f32
    %28 = vector.broadcast %cst_13 : f32 to vector<32x128xf32>
    %29 = arith.addf %9, %28 : vector<32x128xf32>
    %30 = math.log %29 : vector<32x128xf32>
    %cst_14 = arith.constant 0.000000e+00 : f32
    %31 = vector.broadcast %cst_14 : f32 to vector<32x128xf32>
    %32 = arith.subf %31, %30 : vector<32x128xf32>
    %33 = arith.mulf %27, %32 : vector<32x128xf32>
    %34 = arith.subf %33, %20 : vector<32x128xf32>
    %c0_15 = arith.constant 0 : index
    %c0_16 = arith.constant 0 : index
    %c0_17 = arith.constant 0 : index
    %35 = vector.load %arg3[%c0_15, %c0_16, %c0_17] : memref<1x32x9xf32, #tpu.memory_space<vmem>>, vector<1x32x9xf32>
    %36 = vector.shape_cast %35 : vector<1x32x9xf32> to vector<32x9xf32>
    %c0_18 = arith.constant 0 : index
    %c0_19 = arith.constant 0 : index
    %c0_20 = arith.constant 0 : index
    %37 = vector.load %arg4[%c0_18, %c0_19, %c0_20] : memref<1x9x128xf32, #tpu.memory_space<vmem>>, vector<1x9x128xf32>
    %38 = vector.shape_cast %37 : vector<1x9x128xf32> to vector<9x128xf32>
    %39 = vector.extract_strided_slice %36 {offsets = [0, 0], sizes = [32, 1], strides = [1, 1]} : vector<32x9xf32> to vector<32x1xf32>
    %40 = vector.shape_cast %39 : vector<32x1xf32> to vector<32x1xf32>
    %41 = vector.broadcast %40 : vector<32x1xf32> to vector<32x128xf32>
    %42 = vector.extract_strided_slice %36 {offsets = [0, 1], sizes = [32, 1], strides = [1, 1]} : vector<32x9xf32> to vector<32x1xf32>
    %43 = vector.shape_cast %42 : vector<32x1xf32> to vector<32x1xf32>
    %44 = vector.broadcast %43 : vector<32x1xf32> to vector<32x128xf32>
    %45 = vector.extract_strided_slice %36 {offsets = [0, 2], sizes = [32, 1], strides = [1, 1]} : vector<32x9xf32> to vector<32x1xf32>
    %46 = vector.shape_cast %45 : vector<32x1xf32> to vector<32x1xf32>
    %47 = vector.broadcast %46 : vector<32x1xf32> to vector<32x128xf32>
    %48 = vector.extract_strided_slice %36 {offsets = [0, 3], sizes = [32, 1], strides = [1, 1]} : vector<32x9xf32> to vector<32x1xf32>
    %49 = vector.shape_cast %48 : vector<32x1xf32> to vector<32x1xf32>
    %50 = vector.broadcast %49 : vector<32x1xf32> to vector<32x128xf32>
    %51 = vector.extract_strided_slice %36 {offsets = [0, 4], sizes = [32, 1], strides = [1, 1]} : vector<32x9xf32> to vector<32x1xf32>
    %52 = vector.shape_cast %51 : vector<32x1xf32> to vector<32x1xf32>
    %53 = vector.broadcast %52 : vector<32x1xf32> to vector<32x128xf32>
    %54 = vector.extract_strided_slice %36 {offsets = [0, 5], sizes = [32, 1], strides = [1, 1]} : vector<32x9xf32> to vector<32x1xf32>
    %55 = vector.shape_cast %54 : vector<32x1xf32> to vector<32x1xf32>
    %56 = vector.broadcast %55 : vector<32x1xf32> to vector<32x128xf32>
    %57 = vector.extract_strided_slice %36 {offsets = [0, 6], sizes = [32, 1], strides = [1, 1]} : vector<32x9xf32> to vector<32x1xf32>
    %58 = vector.shape_cast %57 : vector<32x1xf32> to vector<32x1xf32>
    %59 = vector.broadcast %58 : vector<32x1xf32> to vector<32x128xf32>
    %60 = vector.extract_strided_slice %36 {offsets = [0, 7], sizes = [32, 1], strides = [1, 1]} : vector<32x9xf32> to vector<32x1xf32>
    %61 = vector.shape_cast %60 : vector<32x1xf32> to vector<32x1xf32>
    %62 = vector.broadcast %61 : vector<32x1xf32> to vector<32x128xf32>
    %63 = vector.extract_strided_slice %36 {offsets = [0, 8], sizes = [32, 1], strides = [1, 1]} : vector<32x9xf32> to vector<32x1xf32>
    %64 = vector.shape_cast %63 : vector<32x1xf32> to vector<32x1xf32>
    %65 = vector.broadcast %64 : vector<32x1xf32> to vector<32x128xf32>
    %66 = vector.extract_strided_slice %38 {offsets = [0, 0], sizes = [1, 128], strides = [1, 1]} : vector<9x128xf32> to vector<1x128xf32>
    %67 = vector.extract_strided_slice %38 {offsets = [1, 0], sizes = [1, 128], strides = [1, 1]} : vector<9x128xf32> to vector<1x128xf32>
    %68 = vector.extract_strided_slice %38 {offsets = [2, 0], sizes = [1, 128], strides = [1, 1]} : vector<9x128xf32> to vector<1x128xf32>
    %69 = vector.extract_strided_slice %38 {offsets = [3, 0], sizes = [1, 128], strides = [1, 1]} : vector<9x128xf32> to vector<1x128xf32>
    %70 = vector.extract_strided_slice %38 {offsets = [4, 0], sizes = [1, 128], strides = [1, 1]} : vector<9x128xf32> to vector<1x128xf32>
    %71 = vector.extract_strided_slice %38 {offsets = [5, 0], sizes = [1, 128], strides = [1, 1]} : vector<9x128xf32> to vector<1x128xf32>
    %72 = vector.extract_strided_slice %38 {offsets = [6, 0], sizes = [1, 128], strides = [1, 1]} : vector<9x128xf32> to vector<1x128xf32>
    %73 = vector.extract_strided_slice %38 {offsets = [7, 0], sizes = [1, 128], strides = [1, 1]} : vector<9x128xf32> to vector<1x128xf32>
    %74 = vector.extract_strided_slice %38 {offsets = [8, 0], sizes = [1, 128], strides = [1, 1]} : vector<9x128xf32> to vector<1x128xf32>
    %75 = vector.broadcast %66 : vector<1x128xf32> to vector<32x128xf32>
    %76 = arith.subf %41, %75 : vector<32x128xf32>
    %77 = math.absf %76 : vector<32x128xf32>
    %78 = vector.broadcast %67 : vector<1x128xf32> to vector<32x128xf32>
    %79 = arith.subf %44, %78 : vector<32x128xf32>
    %80 = math.absf %79 : vector<32x128xf32>
    %81 = arith.addf %77, %80 : vector<32x128xf32>
    %82 = vector.broadcast %68 : vector<1x128xf32> to vector<32x128xf32>
    %83 = arith.subf %47, %82 : vector<32x128xf32>
    %84 = math.absf %83 : vector<32x128xf32>
    %85 = arith.addf %81, %84 : vector<32x128xf32>
    %86 = vector.broadcast %69 : vector<1x128xf32> to vector<32x128xf32>
    %87 = arith.subf %50, %86 : vector<32x128xf32>
    %88 = math.absf %87 : vector<32x128xf32>
    %89 = arith.addf %85, %88 : vector<32x128xf32>
    %90 = vector.broadcast %72 : vector<1x128xf32> to vector<32x128xf32>
    %91 = arith.minimumf %59, %90 : vector<32x128xf32>
    %92 = vector.broadcast %70 : vector<1x128xf32> to vector<32x128xf32>
    %93 = arith.maximumf %53, %92 : vector<32x128xf32>
    %94 = arith.subf %91, %93 : vector<32x128xf32>
    %cst_21 = arith.constant 0.000000e+00 : f32
    %95 = vector.broadcast %cst_21 : f32 to vector<32x128xf32>
    %96 = arith.maximumf %94, %95 : vector<32x128xf32>
    %97 = vector.broadcast %73 : vector<1x128xf32> to vector<32x128xf32>
    %98 = arith.minimumf %62, %97 : vector<32x128xf32>
    %99 = vector.broadcast %71 : vector<1x128xf32> to vector<32x128xf32>
    %100 = arith.maximumf %56, %99 : vector<32x128xf32>
    %101 = arith.subf %98, %100 : vector<32x128xf32>
    %cst_22 = arith.constant 0.000000e+00 : f32
    %102 = vector.broadcast %cst_22 : f32 to vector<32x128xf32>
    %103 = arith.maximumf %101, %102 : vector<32x128xf32>
    %104 = arith.mulf %96, %103 : vector<32x128xf32>
    %105 = vector.broadcast %74 : vector<1x128xf32> to vector<32x128xf32>
    %106 = arith.addf %65, %105 : vector<32x128xf32>
    %107 = arith.subf %106, %104 : vector<32x128xf32>
    %108 = vector.broadcast %72 : vector<1x128xf32> to vector<32x128xf32>
    %109 = arith.maximumf %59, %108 : vector<32x128xf32>
    %110 = vector.broadcast %70 : vector<1x128xf32> to vector<32x128xf32>
    %111 = arith.minimumf %53, %110 : vector<32x128xf32>
    %112 = arith.subf %109, %111 : vector<32x128xf32>
    %113 = vector.broadcast %73 : vector<1x128xf32> to vector<32x128xf32>
    %114 = arith.maximumf %62, %113 : vector<32x128xf32>
    %115 = vector.broadcast %71 : vector<1x128xf32> to vector<32x128xf32>
    %116 = arith.minimumf %56, %115 : vector<32x128xf32>
    %117 = arith.subf %114, %116 : vector<32x128xf32>
    %118 = arith.mulf %112, %117 : vector<32x128xf32>
    %cst_23 = arith.constant 9.99999996E-13 : f32
    %119 = vector.broadcast %cst_23 : f32 to vector<32x128xf32>
    %120 = arith.addf %107, %119 : vector<32x128xf32>
    %121 = tpu.reciprocal %120 {approx = true} : vector<32x128xf32> -> vector<32x128xf32>
    %122 = arith.mulf %120, %121 : vector<32x128xf32>
    %cst_24 = arith.constant 2.000000e+00 : f32
    %123 = vector.broadcast %cst_24 : f32 to vector<32x128xf32>
    %124 = arith.subf %123, %122 : vector<32x128xf32>
    %125 = arith.mulf %121, %124 : vector<32x128xf32>
    %126 = arith.mulf %104, %125 : vector<32x128xf32>
    %127 = arith.subf %118, %107 : vector<32x128xf32>
    %cst_25 = arith.constant 9.99999996E-13 : f32
    %128 = vector.broadcast %cst_25 : f32 to vector<32x128xf32>
    %129 = arith.addf %118, %128 : vector<32x128xf32>
    %130 = tpu.reciprocal %129 {approx = true} : vector<32x128xf32> -> vector<32x128xf32>
    %131 = arith.mulf %129, %130 : vector<32x128xf32>
    %cst_26 = arith.constant 2.000000e+00 : f32
    %132 = vector.broadcast %cst_26 : f32 to vector<32x128xf32>
    %133 = arith.subf %132, %131 : vector<32x128xf32>
    %134 = arith.mulf %130, %133 : vector<32x128xf32>
    %135 = arith.mulf %127, %134 : vector<32x128xf32>
    %136 = arith.subf %126, %135 : vector<32x128xf32>
    %cst_27 = arith.constant 1.000000e+00 : f32
    %137 = vector.broadcast %cst_27 : f32 to vector<32x128xf32>
    %138 = arith.mulf %137, %89 : vector<32x128xf32>
    %cst_28 = arith.constant 1.000000e+00 : f32
    %139 = vector.broadcast %cst_28 : f32 to vector<32x128xf32>
    %140 = arith.mulf %139, %34 : vector<32x128xf32>
    %141 = arith.addf %138, %140 : vector<32x128xf32>
    %cst_29 = arith.constant 1.000000e+00 : f32
    %142 = vector.broadcast %cst_29 : f32 to vector<32x128xf32>
    %143 = arith.mulf %142, %136 : vector<32x128xf32>
    %144 = arith.subf %141, %143 : vector<32x128xf32>
    %c0_30 = arith.constant 0 : index
    %c0_31 = arith.constant 0 : index
    %c0_32 = arith.constant 0 : index
    %145 = vector.load %arg6[%c0_30, %c0_31, %c0_32] : memref<1x32x128xf32, #tpu.memory_space<vmem>>, vector<1x32x128xf32>
    %146 = vector.shape_cast %145 : vector<1x32x128xf32> to vector<32x128xf32>
    %147 = vector.shape_cast %144 : vector<32x128xf32> to vector<1x32x128xf32>
    tpu.vector_store %arg6[%c0_30, %c0_31, %c0_32], %147 {strides = array<i32>} : memref<1x32x128xf32, #tpu.memory_space<vmem>>, vector<1x32x128xf32>,
    return
  }
  func.func @transform_0(%arg0: i32, %arg1: i32) -> (i32, i32, i32) {
    %c0_i32 = arith.constant 0 : i32
    %c0_i32_0 = arith.constant 0 : i32
    return %arg0, %arg1, %c0_i32 : i32, i32, i32
  }
  func.func @transform_1(%arg0: i32, %arg1: i32) -> (i32, i32, i32) {
    %c0_i32 = arith.constant 0 : i32
    %c0_i32_0 = arith.constant 0 : i32
    return %arg0, %arg1, %c0_i32 : i32, i32, i32
  }
  func.func @transform_2(%arg0: i32, %arg1: i32) -> (i32, i32, i32) {
    %c0_i32 = arith.constant 0 : i32
    %c0_i32_0 = arith.constant 0 : i32
    %c0_i32_1 = arith.constant 0 : i32
    return %arg0, %c0_i32, %c0_i32_0 : i32, i32, i32
  }
  func.func @transform_3(%arg0: i32, %arg1: i32) -> (i32, i32, i32) {
    %c0_i32 = arith.constant 0 : i32
    %c0_i32_0 = arith.constant 0 : i32
    %c0_i32_1 = arith.constant 0 : i32
    return %arg0, %c0_i32, %c0_i32_0 : i32, i32, i32
  }
  func.func @transform_4(%arg0: i32, %arg1: i32) -> (i32, i32, i32) {
    %c0_i32 = arith.constant 0 : i32
    %c0_i32_0 = arith.constant 0 : i32
    return %arg0, %arg1, %c0_i32 : i32, i32, i32
  }
}

</mosaic_0001>

<bundles_post_ra>
// kernel: cost_fn.1
= control target key start
LH: loop header
LB: loop body
LE: loop exit
PB: predicated region body
PF: predicated region fallthrough
CT: control target
= control target key end

     0   :  { %s1268_s15 = smov 0   ;;  %s1270_s16 = smov 0   ;;  %s1608_s0 = inlined_call_operand.vmem [shape: f32[3,64,32], index: 0, kind: input, shape index: {}]   ;;  %s1609_s1 = inlined_call_operand.vmem [shape: f32[3,64,9], index: 1, kind: input, shape index: {}]   ;;  %s1610_s2 = inlined_call_operand.vmem [shape: f32[3,9,128], index: 2, kind: input, shape index: {}]   ;;  %s1611_s3 = inlined_call_operand.vmem [shape: f32[3,32,128], index: 3, kind: input, shape index: {}]   ;;  %s1612_s4 = inlined_call_operand.vmem [shape: f32[3,64,128], index: 4, kind: output, shape index: {}]  }
   0x1   :  { %s1272_s17 = smov 0   ;;  %s1274_s18 = smov 0  }
   0x2   :  { %s1276_s19 = smov 0  }
   0x3 LB: > { %s23_s20 = sadd.s32 1, %s1224_s17  ;;  %s26_s21 = sadd.s32 1, %s1228_s18  ;;  %s1232_s19 = sphi %s1276_s19, %s14_s19   ;;  %s1228_s18 = sphi %s1274_s18, %s1616_s18   ;;  %s1224_s17 = sphi %s1272_s17, %s1615_s17   ;;  %s1220_s16 = sphi %s1270_s16, %s1614_s16   ;;  %s1216_s15 = sphi %s1268_s15, %s1613_s15  }
   0x4   : > { %p24_p0 = scmp.ge.s32.totalorder %s23_s20, 2  ;;  %p1017_p1 = scmp.ge.s32.totalorder %s1232_s19, 1 }
   0x5   : > { %p220_p2 = scmp.lt.s32.totalorder %s1232_s19, 7 }
   0x6   : > { %s1618_s20 = smov (%p24_p0, %s23_s20), 0  ;;  %s1620_s21 = smov (!%p24_p0, %s26_s21), %s1228_s18 }
   0x7   : > { %p221_p3 = pnand %p1017_p1, %p220_p2  ;;  %p28_p4 = scmp.ge.s32.totalorder %s1620_s21, 3 }
   0x8   : > { %s1018_s22 = sshll.u32 (!%p221_p3), %s1216_s15, 2  ;;  %p274_p5 = scmp.lt.s32.totalorder (!%p221_p3), %s1220_s16, 2  ;;  %v1234_v0 = vmov (!%p221_p3), 0   ;;  %vm321_vm0 = vcmask (!%p221_p3), 261120   ;;  %v1235_v15 = vmov (!%p221_p3), 1   ;;  %v1236_v16 = vmov (!%p221_p3), 2  }
   0x9   : > { %s1622_s21 = smov (%p28_p4, %s1620_s21), 0  ;;  %224 = sbr.rel (%p221_p3) target bundleno = 303 (0x12f), region = 36 }
   0xa   : > { %1128 = vset.pattern.permute.xlu1 (!%p221_p3), %v1234_v0  ;;  %1127 = vset.pattern.permute.xlu0 (!%p221_p3), %v1234_v0  ;;  %p276_p6 = scmp.lt.s32.totalorder (!%p221_p3), %s1018_s22, 7  ;;  %v1237_v17 = vmov (!%p221_p3), 4   ;;  %v1238_v18 = vmov (!%p221_p3), 5   ;;  %v1239_v19 = vmov (!%p221_p3), 6   ;;  %v1240_v20 = vmov (!%p221_p3), 7  }
   0xb   : > { %v1241_v21 = vmov (!%p221_p3), 8   ;;  %v1242_v22 = vmov (!%p221_p3), 3   ;;  %v661_v23 = vlaneseq (!%p221_p3) }
   0xd   : > { %v1364_v24 = vshrl.u32 (!%p221_p3), %v661_v23, 7 }
   0xf   : > { %v663_v25 = vsub.s32 (!%p221_p3), 0, %v1364_v24  ;;  %v675_v34 = vsub.s32 (!%p221_p3), 1, %v1364_v24  ;;  %v691_v47 = vsub.s32 (!%p221_p3), 2, %v1364_v24 }
  0x10   : > { %s1624_s16 = smov (!%p274_p5, %s1220_s16), 2  ;;  %s1626_s22 = smov (!%p276_p6, %s1018_s22), 7 }
  0x11   : > { %s1019_s23 = sshll.u32 %s1624_s16, 3  ;;  %s1043_s24 = sshll.u32 %s1624_s16, 5 }
  0x12   : > { %s279_s25 = sadd.s32 %s1019_s23, %s1626_s22  ;;  %s302_s28 = scalar_lea.vmem %s1611_s3, %s1043_s24 }
  0x13   : > { %s1305_s29 = sshll.u32 %s279_s25, 3  ;;  %v317_v1 = vld [vmem:[%s302_s28] sm:$0xff]  ;;  %v318_v2 = vld [vmem:[%s302_s28 + $0x8] sm:$0xff]  ;;  %v319_v3 = vld [vmem:[%s302_s28 + $0x10] sm:$0xff]  ;;  %s1042_s10 = sshll.u32 %s1624_s16, 4 }
  0x14   : > { %v1066_v4 = vpack.c.bf16 %v318_v2, %v317_v1  ;;  %s291_s6 = scalar_lea.vmem %s1609_s1, %s1305_s29  ;;  %v320_v5 = vld [vmem:[%s302_s28 + $0x18] sm:$0xff]  ;;  %s281_s9 = scalar_lea.vmem %s1608_s0, %s1305_s29 }
  0x15   : > { %v1311_v6 = vld [vmem:[%s291_s6 + $0x10] sm:$0xff]  ;;  %v1313_v7 = vld [vmem:[%s291_s6] sm:$0xff]  ;;  %v1070_v8 = vpack.c.bf16 %v320_v5, %v319_v3  ;;  %v1321_v11 = vld [vmem:[%s291_s6 + $0x18] sm:$0xff]  ;;  %s1369_s13 = scalar_lea.vmem %s1610_s2, %s1042_s10  ;;  %s311_s16 = scalar_lea.vmem %s1612_s4, %s1305_s29 }
  0x16   : > { %1067 = vmatprep.subr.bf16.mxu0 %v1066_v4  ;;  %1074 = vmatprep.subr.bf16.mxu1 %v1066_v4  ;;  %v313_v9 = vld [vmem:[%s281_s9] sm:$0xff]  ;;  %v315_v10 = vld [vmem:[%s281_s9 + $0x10] sm:$0xff]  ;;  %v1323_v12 = vld [vmem:[%s291_s6 + $0x8] sm:$0xff] }
  0x17   : > { %525 = vperm.xlu1 %1128, %v1311_v6   ;;  %515 = vperm.xlu0 %1127, %v1313_v7   ;;  %v314_v13 = vld [vmem:[%s281_s9 + $0x8] sm:$0xff]  ;;  %v316_v14 = vld [vmem:[%s281_s9 + $0x18] sm:$0xff]  ;;  %v1373_v26 = vld [vmem:[%s1369_s13] sm:$0xff] }
  0x18   : > { %1069 = vmatpush3.bf16.msra.mxu0 %v1066_v4  ;;  %1076 = vmatpush3.bf16.msra.mxu1 %v1066_v4  ;;  %v664_v27 = vrot.slane %v1373_v26, %v663_v25  ;;  %v676_v36 = vrot.slane %v1373_v26, %v675_v34  ;;  %v692_v56 = vrot.slane %v1373_v26, %v691_v47 }
  0x19   : > { %1071 = vmatprep.subr.bf16.mxu0 %v1070_v8  ;;  %1075 = vmatprep.subr.bf16.mxu1 %v1070_v8 }
  0x1a   : > { %1060 = vmatprep.mubr.msk.f32.mxu0 %vm321_vm0, %v313_v9  ;;  %1063 = vmatprep.mubr.msk.f32.mxu1 %vm321_vm0, %v315_v10 }
  0x1b   : > { %530 = vperm.xlu1 %1128, %v1321_v11   ;;  %520 = vperm.xlu0 %1127, %v1323_v12  }
  0x1c   : > { %1073 = vmatpush3.bf16.msra.mxu0 %v1070_v8  ;;  %1077 = vmatpush3.bf16.msra.mxu1 %v1070_v8 }
  0x1f   : > { %1130 = vset.pattern.permute.xlu1 %v1235_v15  ;;  %1129 = vset.pattern.permute.xlu0 %v1235_v15 }
  0x20   : > { %1061 = vmatmul.mubr.msk.f32.vlgmr.msra.gmra.mrb[0].mxu0 %vm321_vm0, %v314_v13  ;;  %1064 = vmatmul.mubr.msk.f32.vlgmr.msra.gmra.mrb[0].mxu1 %vm321_vm0, %v316_v14 }
  0x21   : > { %538 = vperm.xlu1 %1130, %v1323_v12   ;;  %534 = vperm.xlu0 %1129, %v1313_v7  }
  0x25   : > { %542 = vperm.xlu1 %1130, %v1311_v6   ;;  %546 = vperm.xlu0 %1129, %v1321_v11  }
  0x29   : > { %1131 = vset.pattern.permute.xlu1 %v1236_v16  ;;  %1133 = vset.pattern.permute.xlu0 %v1237_v17 }
  0x2a   : > { %550 = vperm.xlu1 %1131, %v1313_v7   ;;  %586 = vperm.xlu0 %1133, %v1323_v12  }
  0x2e   : > { %558 = vperm.xlu1 %1131, %v1311_v6   ;;  %1134 = vset.pattern.permute.xlu0 %v1238_v18 }
  0x2f   : > { %598 = vperm.xlu0 %1134, %v1313_v7  }
  0x32   : > { %1132 = vset.pattern.permute.xlu1 %v1237_v17 }
  0x33   : > { %582 = vperm.xlu1 %1132, %v1313_v7   ;;  %610 = vperm.xlu0 %1134, %v1321_v11  }
  0x37   : > { %590 = vperm.xlu1 %1132, %v1311_v6   ;;  %1137 = vset.pattern.permute.xlu0 %v1239_v19 }
  0x38   : > { %618 = vperm.xlu0 %1137, %v1323_v12  }
  0x3b   : > { %594 = vperm.xlu1 %1132, %v1321_v11  }
  0x3c   : > { %1138 = vset.pattern.permute.xlu0 %v1240_v20 }
  0x3d   : > { %630 = vperm.xlu0 %1138, %v1313_v7  }
  0x3f   : > { %1135 = vset.pattern.permute.xlu1 %v1238_v18 }
  0x40   : > { %602 = vperm.xlu1 %1135, %v1323_v12  }
  0x41   : > { %642 = vperm.xlu0 %1138, %v1321_v11  }
  0x44   : > { %606 = vperm.xlu1 %1135, %v1311_v6  }
  0x45   : > { %1141 = vset.pattern.permute.xlu0 %v1241_v21 }
  0x46   : > { %650 = vperm.xlu0 %1141, %v1323_v12  }
  0x48   : > { %1136 = vset.pattern.permute.xlu1 %v1239_v19 }
  0x49   : > { %614 = vperm.xlu1 %1136, %v1313_v7  }
  0x4a   : > { %1142 = vset.pattern.permute.xlu0 %v1236_v16 }
  0x4b   : > { %554 = vperm.xlu0 %1142, %v1323_v12  }
  0x4d   : > { %622 = vperm.xlu1 %1136, %v1311_v6  }
  0x4f   : > { %562 = vperm.xlu0 %1142, %v1321_v11  }
  0x51   : > { %626 = vperm.xlu1 %1136, %v1321_v11  }
  0x53   : > { %1144 = vset.pattern.permute.xlu0 %v1242_v22 }
  0x54   : > { %574 = vperm.xlu0 %1144, %v1311_v6  }
  0x55   : > { %1139 = vset.pattern.permute.xlu1 %v1240_v20  ;;  %v707_v20 = vsub.s32 3, %v1364_v24 }
  0x56   : > { %634 = vperm.xlu1 %1139, %v1323_v12  }
  0x58   : > { %1145 = vset.pattern.permute.xlu0 %v1241_v21 }
  0x5a   : > { %638 = vperm.xlu1 %1139, %v1311_v6  }
  0x5e   : > { %1140 = vset.pattern.permute.xlu1 %v1241_v21 }
  0x5f   : > { %646 = vperm.xlu1 %1140, %v1313_v7  }
  0x63   : > { %654 = vperm.xlu1 %1140, %v1311_v6  }
  0x67   : > { %658 = vperm.xlu1 %1140, %v1321_v11  }
  0x6b   : > { %1143 = vset.pattern.permute.xlu1 %v1242_v22 }
  0x6c   : > { %566 = vperm.xlu1 %1143, %v1313_v7  }
  0x70   : > { %570 = vperm.xlu1 %1143, %v1323_v12  }
  0x74   : > { %578 = vperm.xlu1 %1143, %v1321_v11  }
  0x96   : > { %v526_v28 = vpop.permute.xlu1 %525  ;;  %v516_v29 = vpop.permute.xlu0 %515 }
  0x97   : > { %v667_v30 = vsub.f32 %v526_v28, %v664_v27  ;;  %v665_v41 = vsub.f32 %v516_v29, %v664_v27  ;;  %v1410_v28 = vrot.slane %v1373_v26, %v707_v20 }
  0x99   : > { %v671_v44 = vand.u32 2147483647, %v667_v30  ;;  %v669_v52 = vand.u32 2147483647, %v665_v41 }
  0x9a   : > { %v531_v31 = vpop.permute.xlu1 %530  ;;  %v521_v32 = vpop.permute.xlu0 %520 }
  0x9b   : > { %v668_v33 = vsub.f32 %v531_v31, %v664_v27  ;;  %v666_v35 = vsub.f32 %v521_v32, %v664_v27 }
  0x9d   : > { %v670_v39 = vand.u32 2147483647, %v666_v35  ;;  %v672_v48 = vand.u32 2147483647, %v668_v33 }
  0xa0   : > { %v539_v37 = vpop.permute.xlu1 %538  ;;  %v535_v38 = vpop.permute.xlu0 %534 }
  0xa1   : > { %v678_v40 = vsub.f32 %v539_v37, %v676_v36  ;;  %v677_v42 = vsub.f32 %v535_v38, %v676_v36  ;;  %v755_v37 = vsub.s32 5, %v1364_v24  ;;  %v731_v38 = vsub.s32 4, %v1364_v24 }
  0xa3   : > { %v682_v43 = vand.u32 2147483647, %v678_v40  ;;  %v681_v53 = vand.u32 2147483647, %v677_v42  ;;  %v747_v40 = vsub.s32 7, %v1364_v24  ;;  %v1428_v42 = vrot.slane %v1373_v26, %v755_v37 }
  0xa4   : > { %v543_v45 = vpop.permute.xlu1 %542  ;;  %v547_v46 = vpop.permute.xlu0 %546 }
  0xa5   : > { %v686_v49 = vadd.f32 %v682_v43, %v670_v39  ;;  %v679_v50 = vsub.f32 %v543_v45, %v676_v36  ;;  %v680_v51 = vsub.f32 %v547_v46, %v676_v36  ;;  %v685_v61 = vadd.f32 %v681_v53, %v669_v52 }
  0xa6   : > { %v723_v39 = vsub.s32 6, %v1364_v24  ;;  %v1431_v43 = vrot.slane %v1373_v26, %v731_v38  ;;  %v1437_v45 = vrot.slane %v1373_v26, %v747_v40  ;;  %v1039_v38 = vld [vmem:[%s1369_s13 + $0x8] ss:$0 sm:$0xff] }
  0xa7   : > { %v683_v54 = vand.u32 2147483647, %v679_v50  ;;  %v684_v55 = vand.u32 2147483647, %v680_v51 }
  0xa9   : > { %v687_v57 = vadd.f32 %v683_v54, %v671_v44  ;;  %v688_v58 = vadd.f32 %v684_v55, %v672_v48  ;;  %v551_v59 = vpop.permute.xlu1 %550  ;;  %v1380_v60 = vpop.permute.xlu0 %586  ;;  %v1434_v44 = vrot.slane %v1373_v26, %v723_v39 }
  0xaa   : > { %v693_v62 = vsub.f32 %v551_v59, %v692_v56  ;;  %v734_v47 = vmax.f32 %v1380_v60, %v1431_v43 }
  0xac   : > { %v697_v63 = vand.u32 2147483647, %v693_v62 }
  0xad   : > { %v559_v0 = vpop.permute.xlu1 %558 }
  0xae   : > { %v1382_v1 = vadd.f32 %v697_v63, %v685_v61  ;;  %v695_v2 = vsub.f32 %v559_v0, %v692_v56  ;;  %v1384_v3 = vpop.permute.xlu0 %598 }
  0xaf   : > { %v757_v48 = vmax.f32 %v1384_v3, %v1428_v42 }
  0xb0   : > { %v699_v4 = vand.u32 2147483647, %v695_v2 }
  0xb2   : > { %v703_v5 = vadd.f32 %v699_v4, %v687_v57  ;;  %v1386_v6 = vpop.permute.xlu1 %582  ;;  %v1388_v7 = vpop.permute.xlu0 %610 }
  0xb3   : > { %v733_v50 = vmax.f32 %v1386_v6, %v1431_v43  ;;  %v789_v26 = vmin.f32 %v1386_v6, %v1431_v43  ;;  %v760_v61 = vmax.f32 %v1388_v7, %v1428_v42  ;;  %v804_v63 = vmin.f32 %v1388_v7, %v1428_v42 }
  0xb6   : > { %v1390_v8 = vpop.permute.xlu1 %590 }
  0xb7   : > { %v619_v9 = vpop.permute.xlu0 %618  ;;  %v735_v0 = vmax.f32 %v1390_v8, %v1431_v43 }
  0xb8   : > { %v726_v24 = vmin.f32 %v619_v9, %v1434_v44  ;;  %v786_v57 = vmax.f32 %v619_v9, %v1434_v44 }
  0xba   : > { %v1392_v10 = vpop.permute.xlu1 %594  ;;  %v738_v62 = vsub.f32 %v726_v24, %v734_v47 }
  0xbb   : > { %v792_v20 = vmin.f32 %v1392_v10, %v1431_v43 }
  0xbc   : > { %v631_v11 = vpop.permute.xlu0 %630 }
  0xbd   : > { %v749_v51 = vmin.f32 %v631_v11, %v1437_v45  ;;  %v797_v52 = vmax.f32 %v631_v11, %v1437_v45  ;;  %v736_v11 = vmax.f32 %v1392_v10, %v1431_v43 }
  0xbf   : > { %v1394_v12 = vpop.permute.xlu1 %602  ;;  %v761_v2 = vsub.f32 %v749_v51, %v757_v48 }
  0xc0   : > { %v1396_v13 = vpop.permute.xlu0 %642 }
  0xc3   : > { %v1398_v14 = vpop.permute.xlu1 %606 }
  0xc4   : > { %v803_v51 = vmin.f32 %v1398_v14, %v1428_v42 }
  0xc5   : > { %v1400_v15 = vpop.permute.xlu0 %650 }
  0xc8   : > { %v615_v16 = vpop.permute.xlu1 %614 }
  0xc9   : > { %v725_v53 = vmin.f32 %v615_v16, %v1434_v44  ;;  %v785_v54 = vmax.f32 %v615_v16, %v1434_v44 }
  0xca   : > { %v555_v17 = vpop.permute.xlu0 %554 }
  0xcb   : > { %v694_v18 = vsub.f32 %v555_v17, %v692_v56  ;;  %v793_v6 = vsub.f32 %v785_v54, %v789_v26 }
  0xcc   : > { %v1402_v19 = vpop.permute.xlu1 %622 }
  0xcd   : > { %v698_v21 = vand.u32 2147483647, %v694_v18  ;;  %v742_v18 = vmax.f32 %v738_v62, 0.0  ;;  %v787_v39 = vmax.f32 %v1402_v19, %v1434_v44 }
  0xce   : > { %v563_v22 = vpop.permute.xlu0 %562 }
  0xcf   : > { %v1405_v23 = vadd.f32 %v698_v21, %v686_v49  ;;  %v696_v25 = vsub.f32 %v563_v22, %v692_v56  ;;  %v801_v49 = vmin.f32 %v1384_v3, %v1428_v42  ;;  %v790_v56 = vmin.f32 %v1380_v60, %v1431_v43 }
  0xd0   : > { %v1407_v27 = vpop.permute.xlu1 %626  ;;  %v752_v60 = vmin.f32 %v1396_v13, %v1437_v45  ;;  %v791_v3 = vmin.f32 %v1390_v8, %v1431_v43  ;;  %v802_v8 = vmin.f32 %v1394_v12, %v1428_v42  ;;  %v765_v22 = vmax.f32 %v761_v2, 0.0 }
  0xd1   : > { %v700_v29 = vand.u32 2147483647, %v696_v25  ;;  %v805_v4 = vsub.f32 %v797_v52, %v801_v49  ;;  %v794_v9 = vsub.f32 %v786_v57, %v790_v56  ;;  %v728_v7 = vmin.f32 %v1407_v27, %v1434_v44 }
  0xd2   : > { %v764_v25 = vsub.f32 %v752_v60, %v760_v61  ;;  %v788_v37 = vmax.f32 %v1407_v27, %v1434_v44 }
  0xd3   : > { %v1412_v30 = vadd.f32 %v700_v29, %v688_v58  ;;  %v575_v31 = vpop.permute.xlu0 %574  ;;  %v758_v58 = vmax.f32 %v1394_v12, %v1428_v42  ;;  %v800_v29 = vmax.f32 %v1396_v13, %v1437_v45  ;;  %v727_v12 = vmin.f32 %v1402_v19, %v1434_v44 }
  0xd4   : > { %v711_v32 = vsub.f32 %v575_v31, %v1410_v28  ;;  %v759_v31 = vmax.f32 %v1398_v14, %v1428_v42  ;;  %v740_v40 = vsub.f32 %v728_v7, %v736_v11  ;;  %v768_v49 = vmax.f32 %v764_v25, 0.0 }
  0xd5   : > { %v1415_v33 = vpop.permute.xlu1 %634  ;;  %v778_v44 = vadd.f32 %v1039_v38, %v1400_v15  ;;  %v796_v26 = vsub.f32 %v788_v37, %v792_v20 }
  0xd6   : > { %v715_v34 = vand.u32 2147483647, %v711_v32  ;;  %v750_v59 = vmin.f32 %v1415_v33, %v1437_v45  ;;  %v798_v47 = vmax.f32 %v1415_v33, %v1437_v45 }
  0xd8   : > { %v1417_v35 = vadd.f32 %v715_v34, %v703_v5  ;;  %v737_v5 = vsub.f32 %v725_v53, %v733_v50  ;;  %v762_v16 = vsub.f32 %v750_v59, %v758_v58  ;;  %v1488_v34 = vmul.f32 %v805_v4, %v793_v6 }
  0xd9   : > { %v1419_v36 = vpop.permute.xlu1 %638  ;;  %v808_v50 = vsub.f32 %v800_v29, %v804_v63  ;;  %v739_v53 = vsub.f32 %v727_v12, %v735_v0  ;;  %v744_v59 = vmax.f32 %v740_v40, 0.0  ;;  %v806_v14 = vsub.f32 %v798_v47, %v802_v8 }
  0xda   : > { %v741_v32 = vmax.f32 %v737_v5, 0.0  ;;  %v766_v43 = vmax.f32 %v762_v16, 0.0  ;;  %v751_v24 = vmin.f32 %v1419_v36, %v1437_v45  ;;  %v799_v19 = vmax.f32 %v1419_v36, %v1437_v45 }
  0xdb   : > { %v1511_v33 = vadd.f32 1e-12, %v1488_v34  ;;  %v1521_v60 = vmul.f32 %v808_v50, %v796_v26  ;;  %v743_v7 = vmax.f32 %v739_v53, 0.0  ;;  %v1528_v16 = vmul.f32 %v806_v14, %v794_v9 }
  0xdc   : > { %v1513_v54 = vmul.f32 %v766_v43, %v742_v18  ;;  %v1515_v56 = vmul.f32 %v765_v22, %v741_v32  ;;  %v763_v42 = vsub.f32 %v751_v24, %v759_v31  ;;  %v807_v61 = vsub.f32 %v799_v19, %v803_v51 }
  0xdd   : > { %v844_v20 = vadd.f32 1e-12, %v1521_v60  ;;  %v842_v22 = vadd.f32 1e-12, %v1528_v16 }
  0xde   : > { %v1425_v41 = vpop.permute.xlu1 %646  ;;  %v1525_v6 = vsub.f32 %v778_v44, %v1513_v54 }
  0xe2   : > { %v1439_v46 = vpop.permute.xlu1 %654 }
  0xe3   : > { %v779_v9 = vadd.f32 %v1039_v38, %v1439_v46 }
  0xe6   : > { %v1456_v55 = vpop.permute.xlu1 %658 }
  0xeb   : > { %v567_v17 = vpop.permute.xlu1 %566 }
  0xec   : > { %v709_v21 = vsub.f32 %v567_v17, %v1410_v28  ;;  %v767_v17 = vmax.f32 %v763_v42, 0.0 }
  0xee   : > { %v713_v10 = vand.u32 2147483647, %v709_v21  ;;  %v1549_v25 = vmul.f32 %v767_v17, %v743_v7 }
  0xef   : > { %v571_v13 = vpop.permute.xlu1 %570 }
  0xf0   : > { %v1502_v48 = vadd.f32 %v713_v10, %v1382_v1  ;;  %v710_v27 = vsub.f32 %v571_v13, %v1410_v28  ;;  %v795_v1 = vsub.f32 %v787_v39, %v791_v3  ;;  %v777_v3 = vadd.f32 %v1039_v38, %v1425_v41 }
  0xf1   : > { %v1553_v31 = vsub.f32 %v779_v9, %v1549_v25 }
  0xf2   : > { %v714_v52 = vand.u32 2147483647, %v710_v27  ;;  %v1532_v18 = vmul.f32 %v807_v61, %v795_v1  ;;  %v1539_v8 = vsub.f32 %v777_v3, %v1515_v56 }
  0xf3   : > { %v579_v57 = vpop.permute.xlu1 %578  ;;  %v1062_v58 = vpop.f32.mrb[0].mxu0  ;;  %v815_v12 = vadd.f32 1e-12, %v1553_v31 }
  0xf4   : > { %v1518_v36 = vadd.f32 %v714_v52, %v1405_v23  ;;  %v1065_v15 = vpop.f32.mrb[0].mxu1  ;;  %v400_v45 = vpop.f32.mrb[1].mxu0  ;;  %v712_v62 = vsub.f32 %v579_v57, %v1410_v28  ;;  %v1036_v63 = vmul.f32 -1.442695, %v1062_v58  ;;  %v780_v23 = vadd.f32 %v1039_v38, %v1456_v55 }
  0xf5   : > { %v1038_v0 = vmul.f32 -1.442695, %v1065_v15  ;;  %v410_v2 = vpop.f32.mrb[1].mxu1  ;;  %v1035_v4 = vmul.f32 -1.442695, %v400_v45  ;;  %v1530_v28 = vmul.f32 %v768_v49, %v744_v59 }
  0xf6   : > { %v1037_v5 = vmul.f32 -1.442695, %v410_v2  ;;  %v716_v11 = vand.u32 2147483647, %v712_v62  ;;  %1146 = vpow2.f32 %v1036_v63  ;;  %v814_v55 = vadd.f32 1e-12, %v1525_v6 }
  0xf7   : > { %1148 = vpow2.f32 %v1038_v0  ;;  %v1544_v21 = vsub.f32 %v780_v23, %v1530_v28  ;;  %v813_v29 = vadd.f32 1e-12, %v1539_v8  ;;  %v838_v63 = vsub.f32 %v1528_v16, %v1525_v6 }
  0xf8   : > { %v1535_v41 = vadd.f32 %v716_v11, %v1412_v30  ;;  %1150 = vpow2.f32 %v1035_v4  ;;  %v843_v30 = vadd.f32 1e-12, %v1532_v18 }
  0xf9   : > { %1152 = vpow2.f32 %v1037_v5  ;;  %v816_v46 = vadd.f32 1e-12, %v1544_v21 }
  0xfa   : > { %1154 = vrcp.f32 %v1511_v33 }
  0xfb   : > { %1156 = vrcp.f32 %v844_v20 }
  0xfc   : > { %1158 = vrcp.f32 %v814_v55 }
  0xfd   : > { %1160 = vrcp.f32 %v842_v22 }
  0xfe   : > { %1162 = vrcp.f32 %v843_v30 }
  0xff   : > { %1164 = vrcp.f32 %v813_v29 }
 0x100   : > { %v1147_v32 = vpop.eup %1146  ;;  %1166 = vrcp.f32 %v816_v46 }
 0x101   : > { %v1149_v37 = vpop.eup %1148  ;;  %v432_v10 = vadd.f32 1.0, %v1147_v32 }
 0x102   : > { %v1151_v38 = vpop.eup %1150  ;;  %v434_v39 = vadd.f32 1.0, %v1149_v37 }
 0x103   : > { %v1153_v40 = vpop.eup %1152  ;;  %1168 = vrcp.f32 %v432_v10  ;;  %v431_v43 = vadd.f32 1.0, %v1151_v38  ;;  %v840_v10 = vsub.f32 %v1521_v60, %v1544_v21 }
 0x104   : > { %1170 = vrcp.f32 %v434_v39  ;;  %v433_v13 = vadd.f32 1.0, %v1153_v40  ;;  %v1155_v47 = vpop.eup %1154 }
 0x105   : > { %1172 = vrcp.f32 %v431_v43  ;;  %v1157_v24 = vpop.eup %1156  ;;  %v849_v50 = vmul.f32 %v1155_v47, %v1511_v33 }
 0x106   : > { %1174 = vrcp.f32 %v815_v12  ;;  %v1159_v27 = vpop.eup %1158  ;;  %v852_v57 = vmul.f32 %v1157_v24, %v844_v20 }
 0x107   : > { %1176 = vrcp.f32 %v433_v13  ;;  %v1161_v49 = vpop.eup %1160  ;;  %v822_v44 = vmul.f32 %v1159_v27, %v814_v55  ;;  %v853_v53 = vsub.f32 2.0, %v849_v50 }
 0x108   : > { %v1163_v51 = vpop.eup %1162  ;;  %v850_v58 = vmul.f32 %v1161_v49, %v842_v22  ;;  %v856_v23 = vsub.f32 2.0, %v852_v57 }
 0x109   : > { %v1165_v19 = vpop.eup %1164  ;;  %v826_v15 = vsub.f32 2.0, %v822_v44  ;;  %v857_v3 = vmul.f32 %v1155_v47, %v853_v53  ;;  %v851_v20 = vmul.f32 %v1163_v51, %v843_v30 }
 0x10a   : > { %v1167_v26 = vpop.eup %1166  ;;  %v821_v33 = vmul.f32 %v1165_v19, %v813_v29  ;;  %v854_v11 = vsub.f32 2.0, %v850_v58  ;;  %v837_v29 = vsub.f32 %v1488_v34, %v1539_v8  ;;  %v860_v39 = vmul.f32 %v1157_v24, %v856_v23 }
 0x10b   : > { %v824_v4 = vmul.f32 %v1167_v26, %v816_v46  ;;  %v830_v17 = vmul.f32 %v1159_v27, %v826_v15  ;;  %v855_v38 = vsub.f32 2.0, %v851_v20 }
 0x10c   : > { %v825_v9 = vsub.f32 2.0, %v821_v33  ;;  %v858_v37 = vmul.f32 %v1161_v49, %v854_v11  ;;  %v1571_v34 = vmul.f32 %v857_v3, %v837_v29  ;;  %v1573_v27 = vmul.f32 %v860_v39, %v840_v10 }
 0x10d   : > { %v1169_v52 = vpop.eup %1168  ;;  %v828_v32 = vsub.f32 2.0, %v824_v4  ;;  %v859_v50 = vmul.f32 %v1163_v51, %v855_v38 }
 0x10e   : > { %v1171_v1 = vpop.eup %1170  ;;  %v452_v59 = vsub.f32 1.0, %v1169_v52  ;;  %v484_v14 = vadd.f32 1e-08, %v1169_v52  ;;  %v829_v40 = vmul.f32 %v1165_v19, %v825_v9  ;;  %v862_v47 = vmul.f32 %v858_v37, %v838_v63 }
 0x10f   : > { %v1173_v42 = vpop.eup %1172  ;;  %v454_v45 = vsub.f32 1.0, %v1171_v1  ;;  %v486_v61 = vadd.f32 1e-08, %v1171_v1  ;;  %v832_v8 = vmul.f32 %v1167_v26, %v828_v32  ;;  %v444_v49 = vmul.f32 %v1169_v52, %v1169_v52 }
 0x110   : > { %v1175_v62 = vpop.eup %1174  ;;  %v456_v0 = vadd.f32 1e-08, %v452_v59  ;;  %1178 = vlog2.f32 %v484_v14  ;;  %v451_v7 = vsub.f32 1.0, %v1173_v42  ;;  %v483_v55 = vadd.f32 1e-08, %v1173_v42 }
 0x111   : > { %v1560_v2 = vpop.eup %1176  ;;  %v458_v5 = vadd.f32 1e-08, %v454_v45  ;;  %1180 = vlog2.f32 %v486_v61  ;;  %v823_v22 = vmul.f32 %v1175_v62, %v815_v12  ;;  %v1569_v12 = vmul.f32 %v830_v17, %v1513_v54 }
 0x112   : > { %1182 = vlog2.f32 %v456_v0  ;;  %v455_v6 = vadd.f32 1e-08, %v451_v7  ;;  %v453_v16 = vsub.f32 1.0, %v1560_v2  ;;  %v485_v46 = vadd.f32 1e-08, %v1560_v2 }
 0x113   : > { %1184 = vlog2.f32 %v458_v5  ;;  %v827_v43 = vsub.f32 2.0, %v823_v22  ;;  %v446_v60 = vmul.f32 %v1171_v1, %v1171_v1  ;;  %v476_v44 = vmul.f32 %v452_v59, %v452_v59 }
 0x114   : > { %1186 = vlog2.f32 %v483_v55  ;;  %v457_v30 = vadd.f32 1e-08, %v453_v16  ;;  %v478_v53 = vmul.f32 %v454_v45, %v454_v45  ;;  %v866_v54 = vsub.f32 %v1569_v12, %v862_v47 }
 0x115   : > { %1188 = vlog2.f32 %v455_v6  ;;  %v833_v19 = vmul.f32 %v829_v40, %v1515_v56  ;;  %v831_v58 = vmul.f32 %v1175_v62, %v827_v43  ;;  %v836_v26 = vmul.f32 %v832_v8, %v1530_v28 }
 0x116   : > { %1190 = vlog2.f32 %v485_v46  ;;  %v443_v33 = vmul.f32 %v1173_v42, %v1173_v42  ;;  %v448_v52 = vmul.f32 0.75, %v444_v49  ;;  %v450_v1 = vmul.f32 0.75, %v446_v60 }
 0x117   : > { %1192 = vlog2.f32 %v457_v30  ;;  %v480_v45 = vmul.f32 0.25, %v476_v44  ;;  %v482_v4 = vmul.f32 0.25, %v478_v53  ;;  %v475_v5 = vmul.f32 %v451_v7, %v451_v7 }
 0x118   : > { %v445_v62 = vmul.f32 %v1560_v2, %v1560_v2  ;;  %v477_v17 = vmul.f32 %v453_v16, %v453_v16  ;;  %v447_v42 = vmul.f32 0.75, %v443_v33  ;;  %v839_v47 = vsub.f32 %v1532_v18, %v1553_v31 }
 0x119   : > { %v479_v10 = vmul.f32 0.25, %v475_v5  ;;  %v868_v49 = vsub.f32 %v836_v26, %v1573_v27 }
 0x11a   : > { %v1179_v13 = vpop.eup %1178  ;;  %v449_v39 = vmul.f32 0.75, %v445_v62  ;;  %v481_v12 = vmul.f32 0.25, %v477_v17 }
 0x11b   : > { %v1181_v21 = vpop.eup %1180  ;;  %v490_v24 = vmul.f32 0.6931472, %v1179_v13  ;;  %v835_v13 = vmul.f32 %v831_v58, %v1549_v25 }
 0x11c   : > { %v1183_v57 = vpop.eup %1182  ;;  %v494_v14 = vmul.f32 0.6931472, %v1181_v21 }
 0x11d   : > { %v1185_v15 = vpop.eup %1184  ;;  %v462_v61 = vmul.f32 0.6931472, %v1183_v57  ;;  %v496_v63 = vsub.f32 0.0, %v490_v24  ;;  %v865_v57 = vsub.f32 %v833_v19, %v1571_v34 }
 0x11e   : > { %v466_v0 = vmul.f32 0.6931472, %v1185_v15  ;;  %v498_v51 = vsub.f32 0.0, %v494_v14  ;;  %v1187_v59 = vpop.eup %1186  ;;  %v863_v14 = vmul.f32 %v859_v50, %v839_v47 }
 0x11f   : > { %v468_v3 = vsub.f32 0.0, %v462_v61  ;;  %v1189_v23 = vpop.eup %1188  ;;  %v488_v56 = vmul.f32 0.6931472, %v1187_v59  ;;  %v500_v55 = vmul.f32 %v496_v63, %v480_v45 }
 0x120   : > { %v470_v11 = vsub.f32 0.0, %v466_v0  ;;  %v1191_v28 = vpop.eup %1190  ;;  %v460_v9 = vmul.f32 0.6931472, %v1189_v23  ;;  %v502_v29 = vmul.f32 %v498_v51, %v482_v4  ;;  %v867_v25 = vsub.f32 %v835_v13, %v863_v14 }
 0x121   : > { %v472_v20 = vmul.f32 %v468_v3, %v448_v52  ;;  %v1193_v22 = vpop.eup %1192  ;;  %v495_v32 = vsub.f32 0.0, %v488_v56  ;;  %v492_v46 = vmul.f32 0.6931472, %v1191_v28 }
 0x122   : > { %v474_v6 = vmul.f32 %v470_v11, %v450_v1  ;;  %v467_v7 = vsub.f32 0.0, %v460_v9  ;;  %v464_v30 = vmul.f32 0.6931472, %v1193_v22 }
 0x123   : > { %v504_v37 = vsub.f32 %v500_v55, %v472_v20  ;;  %v497_v2 = vsub.f32 0.0, %v492_v46  ;;  %v499_v43 = vmul.f32 %v495_v32, %v479_v10 }
 0x124   : > { %v506_v38 = vsub.f32 %v502_v29, %v474_v6  ;;  %v471_v40 = vmul.f32 %v467_v7, %v447_v42  ;;  %v469_v8 = vsub.f32 0.0, %v464_v30 }
 0x125   : > { %v870_v16 = vadd.f32 %v1518_v36, %v504_v37  ;;  %v501_v36 = vmul.f32 %v497_v2, %v481_v12 }
 0x126   : > { %v872_v60 = vadd.f32 %v1535_v41, %v506_v38  ;;  %v503_v44 = vsub.f32 %v499_v43, %v471_v40  ;;  %v473_v24 = vmul.f32 %v469_v8, %v449_v39 }
 0x127   : > { %v874_v21 = vsub.f32 %v870_v16, %v866_v54 }
 0x128   : > { %v876_v53 = vsub.f32 %v872_v60, %v868_v49  ;;  %v869_v15 = vadd.f32 %v1502_v48, %v503_v44  ;;  %v505_v61 = vsub.f32 %v501_v36, %v473_v24 }
 0x129   : > { %878 = vst [vmem:[%s311_s16 + $0x8] sm:$0xff] %v874_v21 }
 0x12a   : > { %880 = vst [vmem:[%s311_s16 + $0x18] sm:$0xff] %v876_v53  ;;  %v873_v58 = vsub.f32 %v869_v15, %v865_v57  ;;  %v871_v18 = vadd.f32 %v1417_v35, %v505_v61 }
 0x12c   : > { %877 = vst [vmem:[%s311_s16] sm:$0xff] %v873_v58  ;;  %v875_v31 = vsub.f32 %v871_v18, %v867_v25 }
 0x12e   : > { %879 = vst [vmem:[%s311_s16 + $0x10] sm:$0xff] %v875_v31 }
 0x12f PF: > { %s14_s19 = sadd.s32 1, %s1232_s19   ;;  %s1613_s15 = smov %s1224_s17 }
 0x130   : > { %p11_p7 = scmp.ge.s32.totalorder %s14_s19, 8   ;;  %s1614_s16 = smov %s1228_s18 }
 0x131   : > { %s1615_s17 = smov %s1618_s20  ;;  %s1616_s18 = smov %s1622_s21 }
 0x132   :  { %13 = sbr.rel (!%p11_p7) target bundleno = 3 (0x3), region = 75 }

</bundles_post_ra>
